<compile_context>
chip_gen: v7x
topology: tpu7x:2x2x1
jax: 0.10.0
libtpu: 0.0.40
codegen_flags: <defaults>
</compile_context>

<pallas_src>
import functools

import jax
import jax.numpy as jnp
from jax.experimental import pallas as pl
from jax.experimental.pallas import tpu as pltpu


def _round_up(x, m):
    return ((x + m - 1) // m) * m


# ---------------------------------------------------------------------------
# Parameter packing (done once, outside the per-step forward).
# ---------------------------------------------------------------------------
def prepare_params(w_mu, b_mu, w_ln, b_ln):
    """Pack the two heads into one lane-dense bf16 weight / f32 bias.

    Column layout (L = latent_dim, OUT_W = round_up(4L, 128)):
        [0:L)   -> w_mu      (mu lanes)
        [L:2L)  -> w_ln      (log_var lanes)
        [2L:3L) -> w_mu      (code lanes: mu component)
        [3L:4L) -> w_ln      (duplicate, makes the roll direction-agnostic)
        [4L:)   -> 0
    """
    D, L = w_mu.shape
    OUT_W = _round_up(4 * L, 128)
    w = jnp.zeros((D, OUT_W), jnp.float32)
    w = w.at[:, 0 * L:1 * L].set(w_mu).at[:, 1 * L:2 * L].set(w_ln)
    w = w.at[:, 2 * L:3 * L].set(w_mu).at[:, 3 * L:4 * L].set(w_ln)
    b = jnp.zeros((OUT_W,), jnp.float32)
    b = b.at[0 * L:1 * L].set(b_mu).at[1 * L:2 * L].set(b_ln)
    b = b.at[2 * L:3 * L].set(b_mu).at[3 * L:4 * L].set(b_ln)
    return w.astype(jnp.bfloat16), b.reshape(1, OUT_W)


# ---------------------------------------------------------------------------
# Kernel
# ---------------------------------------------------------------------------
def _vae_kernel(x_ref, w_ref, b_ref, eps_ref, out_ref, *, latent_dim, apply_act):
    L = latent_dim
    # x read once from HBM as f32; cast to bf16 on the VPU just before the MXU.
    x = x_ref[...].astype(jnp.bfloat16)                       # (TB, D)

    # Single fused MXU matmul -> lane-dense (TB, OUT_W), f32 accumulation.
    y = jnp.dot(x, w_ref[...], preferred_element_type=jnp.float32)
    y = y + b_ref[...]                                         # (1, OUT_W) bias
    if apply_act:                                              # cfg.vae_act == ReLU
        y = jnp.maximum(y, 0.0)                                # pad lanes stay 0
    # TODO(synk): only ReLU / identity (None) activations from get_activ are implemented.

    # Rotate log_var (lanes [L,2L) / [3L,4L)) into the code lanes [2L,3L).
    # The [mu|lv|mu|lv] layout is L-periodic, so either roll direction works.
    y_rot = pltpu.roll(y, shift=L, axis=1)

    # Reparametrize on the full vreg-wide slab (exp -> EUP, mul/add -> VPU).
    code_slab = eps_ref[...] * jnp.exp(0.5 * y_rot) + y

    # Select: lanes [2L,3L) take the code, everything else keeps y = [mu|lv|..|0].
    lane = jax.lax.broadcasted_iota(jnp.int32, y.shape, dimension=1)
    is_code = jnp.logical_and(lane >= 2 * L, lane < 3 * L)
    out_ref[...] = jnp.where(is_code, code_slab, y)            # unmasked full-lane vst


# ---------------------------------------------------------------------------
# Footprint-aware tiling helpers
# ---------------------------------------------------------------------------
def _footprint_bytes(tb, d, out_w):
    x_b = 2 * tb * d * 4          # f32 x tile, double-buffered
    eps_b = 2 * tb * out_w * 4    # f32 eps tile
    out_b = 2 * tb * out_w * 4    # f32 output tile
    w_b = 2 * d * out_w * 2       # bf16 fused weight (conservatively 2 buffers)
    b_b = 2 * out_w * 4
    return x_b + eps_b + out_b + w_b + b_b


def _pick_tb(batch, d, out_w, budget=28 << 20):
    # Single grid step for small batches; cap at 512 rows for large batches.
    tb = batch if batch <= 512 else 512
    # Shrink (multiples of 8 sublanes) if the footprint would not fit VMEM
    # comfortably on any generation (v7x: 64 MiB physical / 32 MiB default scoped).
    while _footprint_bytes(tb, d, out_w) > budget and tb > 8:
        tb = max(8, _round_up(tb // 2, 8))
    return tb


def _vmem_limit(tb, d, out_w):
    need = _footprint_bytes(tb, d, out_w)
    return int(min(max(int(need * 1.25) + (1 << 20), 4 << 20), 100 << 20))


# ---------------------------------------------------------------------------
# Forward wrapper
# ---------------------------------------------------------------------------
def vae_forward(x_nchw, w_packed, b_packed, eps, latent_dim, *, apply_act=True):
    """x_nchw: (B, ...) flattened to (B, D) like torch .view(B, -1).
    w_packed/b_packed: from prepare_params (built once, reused every call).
    eps: (B, OUT_W) f32 iid N(0,1); only lanes [2L, 3L) are consumed.
    Returns (mu, log_var, code), each (B, L) float32.
    """
    B = x_nchw.shape[0]
    x2d = x_nchw.reshape(B, -1)                               # == torch .view(B, -1)
    D = x2d.shape[1]
    OUT_W = w_packed.shape[1]
    L = latent_dim

    TB = _pick_tb(B, D, OUT_W)
    grid = (pl.cdiv(B, TB),)                                   # no wrapper padding

    kernel = functools.partial(_vae_kernel, latent_dim=L, apply_act=apply_act)
    packed = pl.pallas_call(
        kernel,
        out_shape=jax.ShapeDtypeStruct((B, OUT_W), jnp.float32),
        grid=grid,
        in_specs=[
            pl.BlockSpec((TB, D), lambda i: (i, 0)),           # x tile (f32, cast in-kernel)
            pl.BlockSpec((D, OUT_W), lambda i: (0, 0)),        # fused weight, VMEM-resident
            pl.BlockSpec((1, OUT_W), lambda i: (0, 0)),        # fused bias, resident
            pl.BlockSpec((TB, OUT_W), lambda i: (i, 0)),       # lane-dense eps tile
        ],
        out_specs=pl.BlockSpec((TB, OUT_W), lambda i: (i, 0)),
        compiler_params=pltpu.CompilerParams(
            dimension_semantics=("parallel",),                 # shard batch across TCs
            vmem_limit_bytes=_vmem_limit(TB, D, OUT_W),
        ),
    )(x2d, w_packed, b_packed, eps)

    mu = packed[:, 0:L]
    log_var = packed[:, L:2 * L]
    code = packed[:, 2 * L:3 * L]
    return mu, log_var, code


# ---------------------------------------------------------------------------
# References
# ---------------------------------------------------------------------------
def _reference_f32(x_nchw, w_mu, b_mu, w_ln, b_ln, eps, apply_act=True):
    B = x_nchw.shape[0]
    x2d = x_nchw.reshape(B, -1)
    mu = x2d @ w_mu + b_mu
    lv = x2d @ w_ln + b_ln
    if apply_act:
        mu = jnp.maximum(mu, 0.0)
        lv = jnp.maximum(lv, 0.0)
    code = eps * jnp.exp(0.5 * lv) + mu
    return mu, lv, code


def _reference_bf16(x_nchw, w_mu, b_mu, w_ln, b_ln, eps, apply_act=True):
    # Same numerics as the kernel: bf16 operands, f32 accumulation.
    B = x_nchw.shape[0]
    x2d = x_nchw.reshape(B, -1).astype(jnp.bfloat16)
    mu = jnp.dot(x2d, w_mu.astype(jnp.bfloat16),
                 preferred_element_type=jnp.float32) + b_mu
    lv = jnp.dot(x2d, w_ln.astype(jnp.bfloat16),
                 preferred_element_type=jnp.float32) + b_ln
    if apply_act:
        mu = jnp.maximum(mu, 0.0)
        lv = jnp.maximum(lv, 0.0)
    code = eps * jnp.exp(0.5 * lv) + mu
    return mu, lv, code


if __name__ == "__main__":
    key = jax.random.PRNGKey(0)
    k_x, k_wmu, k_bmu, k_wln, k_bln, k_eps = jax.random.split(key, 6)

    # Small shapes consistent with the module: image-like input flattened to
    # input_dim = C*H*W; latent_dim from cfg.
    B, C, H, W = 2, 4, 16, 16
    D = C * H * W            # input_dim = 1024
    L = 32                   # cfg.latent_dim

    x = jax.random.normal(k_x, (B, C, H, W), dtype=jnp.float32)

    # Deterministic parameter init (uniform in +/- 1/sqrt(D), like nn.Linear).
    bound = 1.0 / (D ** 0.5)
    w_mu = jax.random.uniform(k_wmu, (D, L), jnp.float32, -bound, bound)
    b_mu = jax.random.uniform(k_bmu, (L,), jnp.float32, -bound, bound)
    w_ln = jax.random.uniform(k_wln, (D, L), jnp.float32, -bound, bound)
    b_ln = jax.random.uniform(k_bln, (L,), jnp.float32, -bound, bound)

    # Build packed params ONCE (not per forward call).
    w_packed, b_packed = prepare_params(w_mu, b_mu, w_ln, b_ln)
    OUT_W = w_packed.shape[1]

    # eps ~ N(0,1), lane-dense; the kernel consumes lanes [2L, 3L).
    # TODO(synk): torch.randn_like's RNG stream is not reproduced (jax.random used).
    eps_full = jax.random.normal(k_eps, (B, OUT_W), dtype=jnp.float32)
    eps_used = eps_full[:, 2 * L:3 * L]

    mu, log_var, code = jax.block_until_ready(
        vae_forward(x, w_packed, b_packed, eps_full, L, apply_act=True))

    # Exact check against a reference using identical bf16-operand numerics.
    mu_b, lv_b, code_b = _reference_bf16(x, w_mu, b_mu, w_ln, b_ln, eps_used)
    assert jnp.allclose(mu, mu_b, atol=1e-4, rtol=1e-4)
    assert jnp.allclose(log_var, lv_b, atol=1e-4, rtol=1e-4)
    assert jnp.allclose(code, code_b, atol=1e-4, rtol=1e-4)

    # Semantic check against full-f32 reference (bf16 operand rounding only).
    mu_r, lv_r, code_r = _reference_f32(x, w_mu, b_mu, w_ln, b_ln, eps_used)
    assert jnp.allclose(mu, mu_r, atol=5e-2, rtol=5e-2)
    assert jnp.allclose(log_var, lv_r, atol=5e-2, rtol=5e-2)
    assert jnp.allclose(code, code_r, atol=5e-2, rtol=5e-2)

    print("KERNEL_OK")
</pallas_src>

<mosaic_0001>
module attributes {stable_mosaic.version = 11 : i64} {
  func.func @_vae_kernel(%arg0: i32, %arg1: memref<2x1024xf32, #tpu.memory_space<vmem>>, %arg2: memref<1024x128xbf16, #tpu.memory_space<vmem>>, %arg3: memref<1x128xf32, #tpu.memory_space<vmem>>, %arg4: memref<2x128xf32, #tpu.memory_space<vmem>>, %arg5: memref<2x128xf32, #tpu.memory_space<vmem>>) attributes {dimension_semantics = [#tpu.dimension_semantics<parallel>], iteration_bounds = array<i64: 1>, scalar_prefetch = 0 : i64, scratch_operands = 0 : i64, tpu.core_type = #tpu.core_type<tc>, window_params = [{transform_indices = @transform_0, window_bounds = array<i64: 2, 1024>}, {pipeline_mode = #tpu.pipeline_mode<synchronous>, transform_indices = @transform_1, window_bounds = array<i64: 1024, 128>}, {pipeline_mode = #tpu.pipeline_mode<synchronous>, transform_indices = @transform_2, window_bounds = array<i64: 1, 128>}, {transform_indices = @transform_3, window_bounds = array<i64: 2, 128>}, {transform_indices = @transform_4, window_bounds = array<i64: 2, 128>}]} {
    %c0 = arith.constant 0 : index
    %c0_0 = arith.constant 0 : index
    %0 = vector.load %arg1[%c0, %c0_0] : memref<2x1024xf32, #tpu.memory_space<vmem>>, vector<2x1024xf32>
    %1 = arith.truncf %0 : vector<2x1024xf32> to vector<2x1024xbf16>
    %c0_1 = arith.constant 0 : index
    %c0_2 = arith.constant 0 : index
    %2 = vector.load %arg2[%c0_1, %c0_2] : memref<1024x128xbf16, #tpu.memory_space<vmem>>, vector<1024x128xbf16>
    %cst = arith.constant dense<0.000000e+00> : vector<2x128xf32>
    %3 = tpu.matmul %1, %2, %cst {dimension_numbers = #tpu.dot_dimension_numbers<[1], [0], [0], [1], [0, 0, 1, 1], [], []>} : vector<2x1024xbf16>, vector<1024x128xbf16>, vector<2x128xf32> -> vector<2x128xf32>
    %c0_3 = arith.constant 0 : index
    %c0_4 = arith.constant 0 : index
    %4 = vector.load %arg3[%c0_3, %c0_4] : memref<1x128xf32, #tpu.memory_space<vmem>>, vector<1x128xf32>
    %5 = vector.broadcast %4 : vector<1x128xf32> to vector<2x128xf32>
    %6 = arith.addf %3, %5 : vector<2x128xf32>
    %cst_5 = arith.constant 0.000000e+00 : f32
    %7 = vector.broadcast %cst_5 : f32 to vector<2x128xf32>
    %8 = arith.maximumf %6, %7 : vector<2x128xf32>
    %c32_i32 = arith.constant 32 : i32
    %9 = tpu.dynamic_rotate %8 by %c32_i32 dim 1 : vector<2x128xf32>, i32 -> vector<2x128xf32>
    %c0_6 = arith.constant 0 : index
    %c0_7 = arith.constant 0 : index
    %10 = vector.load %arg4[%c0_6, %c0_7] : memref<2x128xf32, #tpu.memory_space<vmem>>, vector<2x128xf32>
    %cst_8 = arith.constant 5.000000e-01 : f32
    %11 = vector.broadcast %cst_8 : f32 to vector<2x128xf32>
    %12 = arith.mulf %11, %9 : vector<2x128xf32>
    %13 = math.exp %12 : vector<2x128xf32>
    %14 = arith.mulf %10, %13 : vector<2x128xf32>
    %15 = arith.addf %14, %8 : vector<2x128xf32>
    %16 = tpu.iota {dimensions = array<i32: 1>} : vector<2x128xi32>
    %c64_i32 = arith.constant 64 : i32
    %17 = vector.broadcast %c64_i32 : i32 to vector<2x128xi32>
    %18 = arith.cmpi sge, %16, %17 : vector<2x128xi32>
    %c96_i32 = arith.constant 96 : i32
    %19 = vector.broadcast %c96_i32 : i32 to vector<2x128xi32>
    %20 = arith.cmpi slt, %16, %19 : vector<2x128xi32>
    %21 = arith.andi %18, %20 : vector<2x128xi1>
    %22 = arith.select %21, %15, %8 : vector<2x128xi1>, vector<2x128xf32>
    %c0_9 = arith.constant 0 : index
    %c0_10 = arith.constant 0 : index
    %23 = vector.load %arg5[%c0_9, %c0_10] : memref<2x128xf32, #tpu.memory_space<vmem>>, vector<2x128xf32>
    tpu.vector_store %arg5[%c0_9, %c0_10], %22 {strides = array<i32>} : memref<2x128xf32, #tpu.memory_space<vmem>>, vector<2x128xf32>,
    return
  }
  func.func @transform_0(%arg0: i32) -> (i32, i32) {
    %c0_i32 = arith.constant 0 : i32
    %c0_i32_0 = arith.constant 0 : i32
    return %arg0, %c0_i32 : i32, i32
  }
  func.func @transform_1(%arg0: i32) -> (i32, i32) {
    %c0_i32 = arith.constant 0 : i32
    %c0_i32_0 = arith.constant 0 : i32
    %c0_i32_1 = arith.constant 0 : i32
    return %c0_i32, %c0_i32_0 : i32, i32
  }
  func.func @transform_2(%arg0: i32) -> (i32, i32) {
    %c0_i32 = arith.constant 0 : i32
    %c0_i32_0 = arith.constant 0 : i32
    %c0_i32_1 = arith.constant 0 : i32
    return %c0_i32, %c0_i32_0 : i32, i32
  }
  func.func @transform_3(%arg0: i32) -> (i32, i32) {
    %c0_i32 = arith.constant 0 : i32
    %c0_i32_0 = arith.constant 0 : i32
    return %arg0, %c0_i32 : i32, i32
  }
  func.func @transform_4(%arg0: i32) -> (i32, i32) {
    %c0_i32 = arith.constant 0 : i32
    %c0_i32_0 = arith.constant 0 : i32
    return %arg0, %c0_i32 : i32, i32
  }
}

</mosaic_0001>

<bundles_post_ra>
// kernel: tpu_custom_call.1
= control target key start
LH: loop header
LB: loop body
LE: loop exit
PB: predicated region body
PF: predicated region fallthrough
CT: control target
= control target key end

     0   :  { %9 = vsyncpa [#allocation3], 0  ;;  %s1199_s0 = inlined_call_operand.hbm [shape: f32[2,1024], index: 0, kind: input, shape index: {}]   ;;  %s1200_s1 = inlined_call_operand.hbm [shape: bf16[1024,128], index: 1, kind: input, shape index: {}]   ;;  %s1201_s2 = inlined_call_operand.vmem [shape: f32[1,128], index: 2, kind: input, shape index: {}]   ;;  %s1202_s3 = inlined_call_operand.vmem [shape: f32[2,128], index: 3, kind: input, shape index: {}]   ;;  %s1203_s4 = inlined_call_operand.hbm [shape: f32[2,128], index: 4, kind: output, shape index: {}]  }
   0x1   :  { %10 = vsyncpa [#allocation6], 0 }
   0x2   :  { %11 = vsyncpa [#allocation4], 0  ;;  %s1110_s15 = smov [#allocation2]   ;;  %s1111_s17 = smov [#allocation5]  }
   0x3   :  { %s18_s16 = sshll.u32 %s1110_s15, 4  ;;  %s27_s18 = sshll.u32 %s1111_s17, 4  ;;  %s19_s16 = int_to_ptr.vmem [resolvable:$true] %s18_s16  ;;  %s1142_s18 = int_to_ptr.vmem [resolvable:$true] %s27_s18 }
   0x4   :  { %s1038_s21 = scalar_lea.hbm %s1199_s0, 256 }
   0x5   :  { %p1039_p0 = scmp.ne.s32.totalorder %s1199_s0, %s1038_s21  ;;  %p1042_p1 = scmp.lt.u32.totalorder %s1038_s21, %s1199_s0 }
   0x7   :  { %p1044_p2 = pnand %p1042_p1, %p1039_p0 }
   0x9   :  { %1047 = shalt.err (!%p1044_p2)
}
   0xa   :  { %s1048_s26 = scalar_lea.vmem %s19_s16, 256  ;;  %p1053_p4 = scmp.lt.s32.totalorder %s19_s16, %s19_s16 }
   0xb   :  { %p1049_p3 = scmp.ne.s32.totalorder %s19_s16, %s1048_s26  ;;  %p1054_p5 = scmp.lt.s32.totalorder %s1048_s26, %s1048_s26 }
   0xd   :  { %p1055_p6 = por %p1054_p5, %p1053_p4 }
   0xf   :  { %p1056_p7 = pnand %p1055_p6, %p1049_p3 }
  0x11   :  { %1059 = shalt.err (!%p1056_p7)
}
  0x12   :  { %21 = dma.hbm_to_vmem [thread:$0]  %s1199_s0, 256, %s19_s16, [#allocation3]  }
  0x13   :  { %s1060_s5 = scalar_lea.hbm %s1200_s1, 8192 }
  0x14   :  { %p1061_p8 = scmp.ne.s32.totalorder %s1200_s1, %s1060_s5  ;;  %p1064_p9 = scmp.lt.u32.totalorder %s1060_s5, %s1200_s1 }
  0x16   :  { %p1066_p10 = pnand %p1064_p9, %p1061_p8 }
  0x18   :  { %1069 = shalt.err (!%p1066_p10)
}
  0x19   :  { %s1070_s10 = scalar_lea.vmem %s1142_s18, 8192  ;;  %p1075_p12 = scmp.lt.s32.totalorder %s1142_s18, %s1142_s18 }
  0x1a   :  { %p1071_p11 = scmp.ne.s32.totalorder %s1142_s18, %s1070_s10  ;;  %p1076_p13 = scmp.lt.s32.totalorder %s1070_s10, %s1070_s10 }
  0x1c   :  { %p1077_p0 = por %p1076_p13, %p1075_p12 }
  0x1e   :  { %p1078_p1 = pnand %p1077_p0, %p1071_p11 }
  0x20   :  { %1081 = shalt.err (!%p1078_p1)
}
  0x21   :  { %s1112_s0 = smov 64   ;;  %s1113_s11 = smov 4  }
  0x22   :  { %33 = dma.hbm_to_vmem [thread:$0]  %s1200_s1, 8192, %s1142_s18, [#allocation6], %s1112_s0, %s1112_s0, %s1113_s11  }
  0x23   :  { %1104 = dma.done.wait [#allocation3], 256  }
  0x24   :  { %1105 = vsyncadd [#allocation3], 4294967040 }
  0x25   :  { %1106 = dma.done.wait [#allocation6], 8192  }
  0x26   :  { %1107 = vsyncadd [#allocation6], 4294959104  ;;  %v970_v0 = vld [vmem:[#allocation5 + $0x40] sm:$0xff]   ;;  %v974_v4 = vld [vmem:[#allocation5 + $0x48] sm:$0xff]   ;;  %v1114_v22 = vmov 1983009808   ;;  %v53_v24 = vlaneseq }
  0x27   :  { %v971_v1 = vld [vmem:[#allocation5 + $0xc0] sm:$0xff]   ;;  %875 = vmatprep.subr.bf16.mxu0 %v970_v0  ;;  %v975_v5 = vld [vmem:[#allocation5 + $0xc8] sm:$0xff]   ;;  %v978_v8 = vld [vmem:[#allocation5 + $0x50] sm:$0xff]   ;;  %v51_v23 = vunpack.c.l.s4 %v1114_v22  ;;  %s1116_s17 = smov [#allocation7]  }
  0x28   :  { %v972_v2 = vld [vmem:[#allocation5] sm:$0xff]   ;;  %897 = vmatprep.subr.bf16.mxu1 %v971_v1  ;;  %v976_v6 = vld [vmem:[#allocation5 + $0x8] sm:$0xff]   ;;  %v979_v9 = vld [vmem:[#allocation5 + $0xd0] sm:$0xff]   ;;  %v54_v30 = vshrl.u32 %v53_v24, 7  ;;  %s800_s18 = sshll.u32 %s1116_s17, 4  ;;  %s801_s18 = int_to_ptr.vmem [resolvable:$true] %s800_s18 }
  0x29   :  { %v973_v3 = vld [vmem:[#allocation5 + $0x80] sm:$0xff]   ;;  %876 = vmatpush3.bf16.msra.mxu0 %v972_v2  ;;  %v977_v7 = vld [vmem:[#allocation5 + $0x88] sm:$0xff]   ;;  %v980_v10 = vld [vmem:[#allocation5 + $0x10] sm:$0xff]   ;;  %v52_v29 = vunpack.c.0.s8 %v51_v23  ;;  %s1082_s19 = scalar_lea.vmem %s801_s18, 32  ;;  %p1087_p3 = scmp.lt.s32.totalorder %s801_s18, %s801_s18 }
  0x2a   :  { %898 = vmatpush3.bf16.msra.mxu1 %v973_v3  ;;  %877 = vmatprep.subr.bf16.mxu0 %v974_v4  ;;  %v981_v11 = vld [vmem:[#allocation5 + $0x90] sm:$0xff]   ;;  %v982_v12 = vld [vmem:[#allocation5 + $0x58] sm:$0xff]   ;;  %v986_v16 = vld [vmem:[#allocation5 + $0x60] sm:$0xff]   ;;  %p1083_p2 = scmp.ne.s32.totalorder %s801_s18, %s1082_s19  ;;  %p1088_p4 = scmp.lt.s32.totalorder %s1082_s19, %s1082_s19 }
  0x2b   :  { %899 = vmatprep.subr.bf16.mxu1 %v975_v5  ;;  %v983_v13 = vld [vmem:[#allocation5 + $0xd8] sm:$0xff]   ;;  %v987_v17 = vld [vmem:[#allocation5 + $0xe0] sm:$0xff]   ;;  %v990_v20 = vld [vmem:[#allocation5 + $0x68] sm:$0xff]   ;;  %v1174_v35 = vsub.s32 %v52_v29, %v54_v30 }
  0x2c   :  { %v984_v14 = vld [vmem:[#allocation5 + $0x18] sm:$0xff]   ;;  %v988_v18 = vld [vmem:[#allocation5 + $0x20] sm:$0xff]   ;;  %v991_v21 = vld [vmem:[#allocation5 + $0xe8] sm:$0xff]   ;;  %p1089_p5 = por %p1088_p4, %p1087_p3 }
  0x2d   :  { %878 = vmatpush3.bf16.msra.mxu0 %v976_v6  ;;  %v985_v15 = vld [vmem:[#allocation5 + $0x98] sm:$0xff]   ;;  %v989_v19 = vld [vmem:[#allocation5 + $0xa0] sm:$0xff]   ;;  %v992_v25 = vld [vmem:[#allocation5 + $0x28] sm:$0xff]  }
  0x2e   :  { %900 = vmatpush3.bf16.msra.mxu1 %v977_v7  ;;  %879 = vmatprep.subr.bf16.mxu0 %v978_v8  ;;  %v993_v26 = vld [vmem:[#allocation5 + $0xa8] sm:$0xff]   ;;  %v994_v27 = vld [vmem:[#allocation5 + $0x70] sm:$0xff]   ;;  %v998_v33 = vld [vmem:[#allocation5 + $0x78] sm:$0xff]   ;;  %p1090_p6 = pnand %p1089_p5, %p1083_p2 }
  0x2f   :  { %901 = vmatprep.subr.bf16.mxu1 %v979_v9  ;;  %v995_v28 = vld [vmem:[#allocation5 + $0xf0] sm:$0xff]   ;;  %v999_v34 = vld [vmem:[#allocation5 + $0xf8] sm:$0xff]   ;;  %v1003_v41 = vld [vmem:[#allocation5 + $0x140] sm:$0xff]  }
  0x30   :  { %v996_v31 = vld [vmem:[#allocation5 + $0x30] sm:$0xff]   ;;  %v1000_v36 = vld [vmem:[#allocation5 + $0x38] sm:$0xff]   ;;  %v1004_v42 = vld [vmem:[#allocation5 + $0x1c0] sm:$0xff]  }
  0x31   :  { %880 = vmatpush3.bf16.msra.mxu0 %v980_v10  ;;  %v997_v32 = vld [vmem:[#allocation5 + $0xb0] sm:$0xff]   ;;  %v1001_v37 = vld [vmem:[#allocation5 + $0xb8] sm:$0xff]   ;;  %v1005_v48 = vld [vmem:[#allocation5 + $0x100] sm:$0xff]  }
  0x32   :  { %902 = vmatpush3.bf16.msra.mxu1 %v981_v11  ;;  %881 = vmatprep.subr.bf16.mxu0 %v982_v12  ;;  %v45_v38 = vld [vmem:[#allocation2] sm:$0xff]  ;;  %v1007_v50 = vld [vmem:[#allocation5 + $0x148] sm:$0xff]   ;;  %v1006_v52 = vld [vmem:[#allocation5 + $0x180] sm:$0xff]  }
  0x33   :  { %903 = vmatprep.subr.bf16.mxu1 %v983_v13  ;;  %v56_v39 = vrot.slane %v45_v38, %v1174_v35  ;;  %v49_v40 = vcombine.high %v45_v38, %v45_v38  ;;  %v1008_v53 = vld [vmem:[#allocation5 + $0x1c8] sm:$0xff]   ;;  %v1011_v55 = vld [vmem:[#allocation5 + $0x150] sm:$0xff]   ;;  %v1015_v59 = vld [vmem:[#allocation5 + $0x158] sm:$0xff]  }
  0x34   :  { %v1009_v54 = vld [vmem:[#allocation5 + $0x108] sm:$0xff]   ;;  %v1012_v57 = vld [vmem:[#allocation5 + $0x1d0] sm:$0xff]   ;;  %v1016_v61 = vld [vmem:[#allocation5 + $0x1d8] sm:$0xff]  }
  0x35   :  { %882 = vmatpush3.bf16.msra.mxu0 %v984_v14  ;;  %v64_v43 = vcombine.high %v56_v39, %v56_v39  ;;  %v63_v44 = vrot.slane %v49_v40, %v1174_v35  ;;  %v91_v45 = vpack.c.bf16 %v56_v39, %v56_v39  ;;  %v1010_v56 = vld [vmem:[#allocation5 + $0x188] sm:$0xff]   ;;  %v1013_v58 = vld [vmem:[#allocation5 + $0x110] sm:$0xff]   ;;  %v1017_v62 = vld [vmem:[#allocation5 + $0x118] sm:$0xff]  }
  0x36   :  { %904 = vmatpush3.bf16.msra.mxu1 %v985_v15  ;;  %883 = vmatprep.subr.bf16.mxu0 %v986_v16  ;;  %v1014_v60 = vld [vmem:[#allocation5 + $0x190] sm:$0xff]   ;;  %v1019_v63 = vld [vmem:[#allocation5 + $0x160] sm:$0xff]   ;;  %v1018_v0 = vld [vmem:[#allocation5 + $0x198] sm:$0xff]  }
  0x37   :  { %905 = vmatprep.subr.bf16.mxu1 %v987_v17  ;;  %v92_v46 = vpack.c.bf16 %v64_v43, %v64_v43  ;;  %v65_v47 = vcombine.high %v63_v44, %v63_v44  ;;  %v93_v49 = vpack.c.bf16 %v63_v44, %v63_v44  ;;  %v1020_v1 = vld [vmem:[#allocation5 + $0x1e0] sm:$0xff]   ;;  %v1023_v3 = vld [vmem:[#allocation5 + $0x168] sm:$0xff]   ;;  %v1027_v7 = vld [vmem:[#allocation5 + $0x170] sm:$0xff]  }
  0x38   :  { %v1021_v2 = vld [vmem:[#allocation5 + $0x120] sm:$0xff]   ;;  %v1024_v5 = vld [vmem:[#allocation5 + $0x1e8] sm:$0xff]   ;;  %v1028_v9 = vld [vmem:[#allocation5 + $0x1f0] sm:$0xff]  }
  0x39   :  { %884 = vmatpush3.bf16.msra.mxu0 %v988_v18  ;;  %650 = vmatprep.mubr.bf16.mxu0 %v92_v46  ;;  %v94_v51 = vpack.c.bf16 %v65_v47, %v65_v47  ;;  %v1022_v4 = vld [vmem:[#allocation5 + $0x1a0] sm:$0xff]   ;;  %v1025_v6 = vld [vmem:[#allocation5 + $0x128] sm:$0xff]   ;;  %v1029_v10 = vld [vmem:[#allocation5 + $0x130] sm:$0xff]  }
  0x3a   :  { %906 = vmatpush3.bf16.msra.mxu1 %v989_v19  ;;  %885 = vmatprep.subr.bf16.mxu0 %v990_v20  ;;  %v1026_v8 = vld [vmem:[#allocation5 + $0x1a8] sm:$0xff]   ;;  %v1031_v11 = vld [vmem:[#allocation5 + $0x178] sm:$0xff]   ;;  %v1030_v12 = vld [vmem:[#allocation5 + $0x1b0] sm:$0xff]  }
  0x3b   :  { %907 = vmatprep.subr.bf16.mxu1 %v991_v21  ;;  %690 = vmatprep.mubr.bf16.mxu1 %v94_v51  ;;  %v1032_v13 = vld [vmem:[#allocation5 + $0x1f8] sm:$0xff]  }
  0x3c   :  { %v46_v14 = vld [vmem:[#allocation2 + $0x8] sm:$0xff] }
  0x3d   :  { %886 = vmatpush3.bf16.msra.mxu0 %v992_v25  ;;  %v1033_v15 = vld [vmem:[#allocation5 + $0x138] sm:$0xff]   ;;  %v73_v16 = vrot.slane %v46_v14, %v1174_v35  ;;  %v66_v17 = vcombine.high %v46_v14, %v46_v14 }
  0x3e   :  { %908 = vmatpush3.bf16.msra.mxu1 %v993_v26  ;;  %887 = vmatprep.subr.bf16.mxu0 %v994_v27  ;;  %v1034_v18 = vld [vmem:[#allocation5 + $0x1b8] sm:$0xff]  }
  0x3f   :  { %909 = vmatprep.subr.bf16.mxu1 %v995_v28  ;;  %v81_v19 = vcombine.high %v73_v16, %v73_v16  ;;  %v80_v20 = vrot.slane %v66_v17, %v1174_v35  ;;  %v95_v21 = vpack.c.bf16 %v73_v16, %v73_v16  ;;  %v810_v28 = vld [vmem:[%s1201_s2] ss:$0 sm:$0xff]  ;;  %s1115_s2 = smov 32  }
  0x41   :  { %888 = vmatpush3.bf16.msra.mxu0 %v996_v31  ;;  %v96_v22 = vpack.c.bf16 %v81_v19, %v81_v19  ;;  %v82_v23 = vcombine.high %v80_v20, %v80_v20  ;;  %v97_v25 = vpack.c.bf16 %v80_v20, %v80_v20 }
  0x42   :  { %910 = vmatpush3.bf16.msra.mxu1 %v997_v32  ;;  %889 = vmatprep.subr.bf16.mxu0 %v998_v33 }
  0x43   :  { %911 = vmatprep.subr.bf16.mxu1 %v999_v34  ;;  %v98_v26 = vpack.c.bf16 %v82_v23, %v82_v23 }
  0x45   :  { %890 = vmatpush3.bf16.msra.mxu0 %v1000_v36 }
  0x46   :  { %912 = vmatpush3.bf16.msra.mxu1 %v1001_v37  ;;  %919 = vmatprep.subr.bf16.mxu0 %v1003_v41 }
  0x47   :  { %941 = vmatprep.subr.bf16.mxu1 %v1004_v42 }
  0x48   :  { %651 = vmatmul.mubr.bf16.vlgmr.msra.gmra.mrb[0].mxu0 %v91_v45 }
  0x49   :  { %920 = vmatpush3.bf16.msra.mxu0 %v1005_v48  ;;  %691 = vmatmul.mubr.bf16.vlgmr.msra.gmra.mrb[0].mxu1 %v93_v49 }
  0x4a   :  { %921 = vmatprep.subr.bf16.mxu0 %v1007_v50  ;;  %942 = vmatpush3.bf16.msra.mxu1 %v1006_v52 }
  0x4b   :  { %943 = vmatprep.subr.bf16.mxu1 %v1008_v53  ;;  %730 = vmatprep.mubr.bf16.mxu0 %v96_v22 }
  0x4c   :  { %770 = vmatprep.mubr.bf16.mxu1 %v98_v26 }
  0x4d   :  { %922 = vmatpush3.bf16.msra.mxu0 %v1009_v54 }
  0x4e   :  { %923 = vmatprep.subr.bf16.mxu0 %v1011_v55  ;;  %944 = vmatpush3.bf16.msra.mxu1 %v1010_v56  ;;  %v788_v56 = vand.u32 127, %v53_v24 }
  0x4f   :  { %945 = vmatprep.subr.bf16.mxu1 %v1012_v57  ;;  %v781_v57 = vld [vmem:[%s1202_s3] sm:$0x3] }
  0x50   :  { %vm789_vm0 = vcmp.ge.s32.totalorder %v788_v56, 64  ;;  %vm790_vm1 = vcmp.lt.s32.totalorder %v788_v56, 96 }
  0x51   :  { %924 = vmatpush3.bf16.msra.mxu0 %v1013_v58  ;;  %vm791_vm2 = vmand %vm789_vm0, %vm790_vm1 }
  0x52   :  { %925 = vmatprep.subr.bf16.mxu0 %v1015_v59  ;;  %946 = vmatpush3.bf16.msra.mxu1 %v1014_v60 }
  0x53   :  { %947 = vmatprep.subr.bf16.mxu1 %v1016_v61 }
  0x55   :  { %926 = vmatpush3.bf16.msra.mxu0 %v1017_v62 }
  0x56   :  { %927 = vmatprep.subr.bf16.mxu0 %v1019_v63  ;;  %948 = vmatpush3.bf16.msra.mxu1 %v1018_v0 }
  0x57   :  { %949 = vmatprep.subr.bf16.mxu1 %v1020_v1 }
  0x59   :  { %928 = vmatpush3.bf16.msra.mxu0 %v1021_v2 }
  0x5a   :  { %929 = vmatprep.subr.bf16.mxu0 %v1023_v3  ;;  %950 = vmatpush3.bf16.msra.mxu1 %v1022_v4 }
  0x5b   :  { %951 = vmatprep.subr.bf16.mxu1 %v1024_v5 }
  0x5d   :  { %930 = vmatpush3.bf16.msra.mxu0 %v1025_v6 }
  0x5e   :  { %931 = vmatprep.subr.bf16.mxu0 %v1027_v7  ;;  %952 = vmatpush3.bf16.msra.mxu1 %v1026_v8 }
  0x5f   :  { %953 = vmatprep.subr.bf16.mxu1 %v1028_v9 }
  0x61   :  { %932 = vmatpush3.bf16.msra.mxu0 %v1029_v10 }
  0x62   :  { %933 = vmatprep.subr.bf16.mxu0 %v1031_v11  ;;  %954 = vmatpush3.bf16.msra.mxu1 %v1030_v12 }
  0x63   :  { %955 = vmatprep.subr.bf16.mxu1 %v1032_v13 }
  0x65   :  { %934 = vmatpush3.bf16.msra.mxu0 %v1033_v15 }
  0x66   :  { %956 = vmatpush3.bf16.msra.mxu1 %v1034_v18 }
  0x68   :  { %731 = vmatmul.mubr.bf16.vlgmr.msra.gmra.mrb[4].mxu0 %v95_v21 }
  0x69   :  { %771 = vmatmul.mubr.bf16.vlgmr.msra.gmra.mrb[4].mxu1 %v97_v25 }
 0x11b   :  { %v891_v27 = vpop.f32.mrb[0].mxu0 }
 0x11c   :  { %v892_v29 = vpop.f32.mrb[1].mxu0  ;;  %v913_v30 = vpop.f32.mrb[0].mxu1 }
 0x11d   :  { %v893_v31 = vadd.f32 %v892_v29, %v891_v27  ;;  %v894_v32 = vpop.f32.mrb[2].mxu0  ;;  %v914_v33 = vpop.f32.mrb[1].mxu1 }
 0x11e   :  { %v895_v34 = vpop.f32.mrb[3].mxu0  ;;  %v915_v36 = vadd.f32 %v914_v33, %v913_v30  ;;  %v916_v37 = vpop.f32.mrb[2].mxu1 }
 0x11f   :  { %v653_v35 = vadd.f32 %v893_v31, %v810_v28  ;;  %v917_v38 = vpop.f32.mrb[3].mxu1 }
 0x121   :  { %v693_v39 = vadd.f32 %v915_v36, %v653_v35 }
 0x13b   :  { %v935_v40 = vpop.f32.mrb[4].mxu0 }
 0x13c   :  { %v936_v41 = vpop.f32.mrb[5].mxu0  ;;  %v957_v42 = vpop.f32.mrb[4].mxu1 }
 0x13d   :  { %v937_v43 = vadd.f32 %v936_v41, %v935_v40  ;;  %v938_v44 = vpop.f32.mrb[6].mxu0  ;;  %v958_v45 = vpop.f32.mrb[5].mxu1 }
 0x13e   :  { %v939_v46 = vpop.f32.mrb[7].mxu0  ;;  %v959_v48 = vadd.f32 %v958_v45, %v957_v42  ;;  %v960_v49 = vpop.f32.mrb[6].mxu1 }
 0x13f   :  { %v733_v47 = vadd.f32 %v937_v43, %v693_v39  ;;  %v961_v50 = vpop.f32.mrb[7].mxu1 }
 0x141   :  { %v773_v51 = vadd.f32 %v959_v48, %v733_v47 }
 0x143   :  { %v778_v52 = vmax.f32 %v773_v51, 0.0 }
 0x145   :  { %779 = vrot.lane.b32.xlu0 %v778_v52, %s1115_s2 }
 0x1b7   :  { %v780_v53 = vpop.permute.xlu0 %779 }
 0x1b8   :  { %v782_v54 = vmul.f32 0.5, %v780_v53 }
 0x1ba   :  { %v783_v55 = vmul.f32 1.442695, %v782_v54 }
 0x1bc   :  { %1036 = vpow2.f32 %v783_v55 }
 0x1c6   :  { %v1037_v58 = vpop.eup %1036 }
 0x1c7   :  { %v785_v59 = vmul.f32 %v1037_v58, %v781_v57 }
 0x1c9   :  { %v786_v60 = vadd.f32 %v785_v59, %v778_v52 }
 0x1cb   :  { %v792_v61 = vsel %vm791_vm2, %v786_v60, %v778_v52 }
 0x1cc   :  { %793 = vst [vmem:[#allocation7] sm:$0x3] %v792_v61 }
 0x1cd   :  { %1093 = shalt.err (!%p1090_p6)
}
 0x1ce   :  { %s1094_s21 = scalar_lea.hbm %s1203_s4, 32 }
 0x1cf   :  { %p1095_p7 = scmp.ne.s32.totalorder %s1203_s4, %s1094_s21  ;;  %p1098_p8 = scmp.lt.u32.totalorder %s1094_s21, %s1203_s4 }
 0x1d1   :  { %p1100_p9 = pnand %p1098_p8, %p1095_p7 }
 0x1d3   :  { %1103 = shalt.err (!%p1100_p9)
}
 0x1d4   :  { %803 = dma.vmem_to_hbm [thread:$0]  %s801_s18, 32, %s1203_s4, [#allocation4]  }
 0x1d5   :  { %1108 = dma.done.wait [#allocation4], 32  }
 0x1d6   :  { %1109 = vsyncadd [#allocation4], 4294967264 }
 0x1d7   :  { %807 = vsyncpa [#allocation3], 1 }
 0x1d8   :  { %808 = vsyncpa [#allocation6], 1 }
 0x1d9   :  { %809 = vsyncpa [#allocation4], 1 }

</bundles_post_ra>
